<compile_context>
chip_gen: v7x
topology: tpu7x:2x2x1
jax: 0.10.0
libtpu: 0.0.40
codegen_flags: <defaults>
</compile_context>

<pallas_src>
import numpy as np
import jax
import jax.numpy as jnp
from jax import lax
from jax.experimental import pallas as pl
from jax.experimental.pallas import tpu as pltpu


# ----------------------------------------------------------------------------
# ChannelFirstLayerNorm on a [C, tN] tile: normalize over the channel axis.
# Sublane reduction -> XLU slot, free while the MXU is busy (do NOT transpose).
# ----------------------------------------------------------------------------
def _cf_layer_norm(v, g, b, eps=1e-5):
    mu = jnp.mean(v, axis=0, keepdims=True)
    var = jnp.mean((v - mu) ** 2, axis=0, keepdims=True)
    return (v - mu) * lax.rsqrt(var + eps) * g + b


# ----------------------------------------------------------------------------
# Main block kernel (the path that determines the module output):
# residual + norm_attn + FFN + norm_ff, fully fused, [C, B*T] layout.
# TODO(synk): VITSFeedForwardLayer conv kernel_size assumed 1 (pointwise);
# a kernel_size>1 conv would need T-halo tiles.
# ----------------------------------------------------------------------------
def _block_kernel(x_ref, m_ref, w1_ref, b1_ref, w2_ref, pc_ref, o_ref):
    x = x_ref[...]                       # [C, tN] f32
    m = m_ref[...]                       # [1, tN] f32
    pc = pc_ref[...]                     # [C, 5]  f32 packed per-channel params
    g1, be1 = pc[:, 0:1], pc[:, 1:2]
    g2, be2 = pc[:, 2:3], pc[:, 3:4]
    b2 = pc[:, 4:5]

    # y = attn(x, attn_mask) is discarded by the module's forward
    # (y = self.dropout(x)); dropout is identity in eval mode -> residual x + x.
    xn = _cf_layer_norm(x + x, g1, be1)                               # norm_attn

    # FFN: conv1(x * mask) -> relu -> dropout(id) -> conv2(h * mask) -> * mask
    xm = (xn * m).astype(jnp.bfloat16)
    hid = jnp.maximum(
        jnp.dot(w1_ref[...], xm, preferred_element_type=jnp.float32)
        + b1_ref[...], 0.0)                                           # [F, tN] f32
    hm = (hid * m).astype(jnp.bfloat16)
    y = (jnp.dot(w2_ref[...], hm, preferred_element_type=jnp.float32)
         + b2) * m                                                    # [C, tN] f32

    o_ref[...] = _cf_layer_norm(xn + y, g2, be2).astype(o_ref.dtype)  # norm_ff


def block_pallas(x, x_mask, p, *, tile_n=512):
    """x: [B, C, T]; x_mask: [B, 1, T] -> [B, C, T]."""
    B, C, T = x.shape
    F = p["w1"].shape[0]
    N = B * T

    # Fold batch into the lane axis (weights are shared across B; LN/FFN are
    # per-column independent), pad to a lane-dense multiple-of-128 tile.
    tN = int(min(tile_n, pl.cdiv(N, 128) * 128))
    Npad = int(pl.cdiv(N, tN) * tN)

    x2 = jnp.transpose(x, (1, 0, 2)).reshape(C, N)          # [C, B*T]
    m2 = jnp.transpose(x_mask, (1, 0, 2)).reshape(1, N)     # [1, B*T]
    if Npad != N:
        x2 = jnp.pad(x2, ((0, 0), (0, Npad - N)))
        m2 = jnp.pad(m2, ((0, 0), (0, Npad - N)))

    # Pack the six tiny per-channel params into a single [C, 5] input.
    pC = jnp.concatenate(
        [p["ln1_g"], p["ln1_b"], p["ln2_g"], p["ln2_b"], p["b2"]], axis=1)

    # Explicit VMEM budget (v7x has only 64 MiB physical per TC).
    est_vmem = (
        2 * (4 * C * tN + 4 * tN + 4 * C * tN)              # x, mask, out (dbl-buf)
        + 2 * (2 * F * C + 4 * F + 2 * C * F + 4 * C * 5)   # resident weights/params
        + 3 * 4 * F * tN                                     # hid/xm/hm headroom
    )
    vmem_limit = int(min(max(2 * est_vmem, 16 * 1024 * 1024), 48 * 1024 * 1024))

    out2 = pl.pallas_call(
        _block_kernel,
        out_shape=jax.ShapeDtypeStruct((C, Npad), x.dtype),
        grid=(Npad // tN,),
        in_specs=[
            pl.BlockSpec((C, tN), lambda i: (0, i)),   # x columns
            pl.BlockSpec((1, tN), lambda i: (0, i)),   # mask columns
            pl.BlockSpec((F, C), lambda i: (0, 0)),    # ff conv1 weight (bf16)
            pl.BlockSpec((F, 1), lambda i: (0, 0)),    # ff conv1 bias
            pl.BlockSpec((C, F), lambda i: (0, 0)),    # ff conv2 weight (bf16)
            pl.BlockSpec((C, 5), lambda i: (0, 0)),    # packed LN params + conv2 bias
        ],
        out_specs=pl.BlockSpec((C, tN), lambda i: (0, i)),
        compiler_params=pltpu.CompilerParams(
            dimension_semantics=("parallel",),
            vmem_limit_bytes=vmem_limit),
    )(x2, m2, p["w1"], p["b1"], p["w2"], pC)

    return jnp.transpose(out2[:, :N].reshape(C, B, T), (1, 0, 2))


# ----------------------------------------------------------------------------
# Optional attention kernel (result discarded by the module's forward; kept
# OFF the production path).  Heads fused into one QKV matmul + head-batched
# einsums; mask built in-kernel from per-batch lengths in SMEM.
# TODO(synk): relative-position key/value embeddings of
# RelativeMultiHeadAttentionLayer are omitted; the reference forward discards
# the attention output, so block semantics are unchanged.
# TODO(synk): materializes [H,T,T] scores; needs flash-style KV tiling before
# use at production sequence lengths.
# ----------------------------------------------------------------------------
def _attn_kernel(len_ref, x_ref, wqkv_ref, bqkv_ref, wo_ref, bo_ref, o_ref,
                 *, num_heads):
    C, T = x_ref.shape
    H = num_heads
    D = C // H
    b = pl.program_id(0)
    L = len_ref[b]                                        # valid length (SMEM scalar)

    x = x_ref[...].astype(jnp.bfloat16)                   # [C, T]
    qkv = (jnp.dot(wqkv_ref[...], x, preferred_element_type=jnp.float32)
           + bqkv_ref[...])                               # [3C, T] f32

    scale = 1.0 / float(np.sqrt(D))
    q = ((qkv[:C, :] * scale).astype(jnp.bfloat16)).reshape(H, D, T)
    k = (qkv[C:2 * C, :].astype(jnp.bfloat16)).reshape(H, D, T)
    v = (qkv[2 * C:, :].astype(jnp.bfloat16)).reshape(H, D, T)

    # attn_mask = x_mask outer x_mask  ->  valid iff query and key are in-range
    row = lax.broadcasted_iota(jnp.int32, (T, T), 0)      # query index
    col = lax.broadcasted_iota(jnp.int32, (T, T), 1)      # key index
    valid = (row < L) & (col < L)

    s = jnp.einsum("hdq,hdk->hqk", q, k,
                   preferred_element_type=jnp.float32)    # [H, Tq, Tk]
    s = jnp.where(valid[None], s, jnp.float32(-1e4))
    s = s - jnp.max(s, axis=-1, keepdims=True)
    p_ = jnp.exp(s)
    p_ = p_ * pl.reciprocal(jnp.sum(p_, axis=-1, keepdims=True), approx=True)

    o = jnp.einsum("hdk,hqk->hdq", v, p_.astype(jnp.bfloat16),
                   preferred_element_type=jnp.float32)    # [H, D, Tq]
    cat = o.reshape(C, T).astype(jnp.bfloat16)
    out = (jnp.dot(wo_ref[...], cat, preferred_element_type=jnp.float32)
           + bo_ref[...])                                 # [C, T] f32

    # re-mask padded query positions (they otherwise hold uniform-softmax junk)
    q_valid = lax.broadcasted_iota(jnp.int32, (1, T), 1) < L
    o_ref[...] = jnp.where(q_valid, out, 0.0).astype(o_ref.dtype)


def relative_mha_pallas(x, lengths, p):
    """x: [B, C, T]; lengths: [B] int32 -> [B, C, T] attention output (NCT)."""
    B, C, T = x.shape
    H = int(p["num_heads"])

    def kernel(*refs):
        return _attn_kernel(*refs, num_heads=H)

    return pl.pallas_call(
        kernel,
        out_shape=jax.ShapeDtypeStruct((B, C, T), x.dtype),
        grid_spec=pltpu.PrefetchScalarGridSpec(
            num_scalar_prefetch=1,
            grid=(B,),
            in_specs=[
                pl.BlockSpec((None, C, T), lambda b, lens: (b, 0, 0)),  # x
                pl.BlockSpec((3 * C, C), lambda b, lens: (0, 0)),       # wqkv (bf16)
                pl.BlockSpec((3 * C, 1), lambda b, lens: (0, 0)),       # bqkv
                pl.BlockSpec((C, C), lambda b, lens: (0, 0)),           # wo (bf16)
                pl.BlockSpec((C, 1), lambda b, lens: (0, 0)),           # bo
            ],
            out_specs=pl.BlockSpec((None, C, T), lambda b, lens: (b, 0, 0)),
        ),
        compiler_params=pltpu.CompilerParams(dimension_semantics=("parallel",)),
    )(lengths, x, p["wqkv"], p["bqkv"], p["wo"], p["bo"])


# ----------------------------------------------------------------------------
# Module-level wrapper (mirrors VITSTransformerBlock.forward)
# ----------------------------------------------------------------------------
def vits_transformer_block(x, x_mask, attn_mask, params,
                           *, compute_discarded_attention=False):
    """x: [B, C, T], x_mask: [B, 1, T], attn_mask: [B, 1, T, T] -> [B, C, T].

    The module computes y = self.attn(x, attn_mask) and then immediately
    overwrites it with y = self.dropout(x); the attention output never affects
    the result.  The dead attention call is skipped unless explicitly
    requested (keep False on any production / jitted serving path).
    """
    del attn_mask  # dead attention path rebuilds it in-kernel from x_mask lengths
    if compute_discarded_attention:
        lengths = jnp.sum(x_mask[:, 0, :], axis=-1).astype(jnp.int32)
        _ = relative_mha_pallas(x, lengths, params)   # result discarded, as in the module
    return block_pallas(x, x_mask, params)


# ----------------------------------------------------------------------------
# Deterministic synthetic parameters
# ----------------------------------------------------------------------------
def init_params(key, channels, num_heads, ff_mult=4):
    C, H = channels, num_heads
    F = ff_mult * C
    ks = jax.random.split(key, 12)

    def n(k, shape, scale=0.1, dtype=jnp.float32):
        return (scale * jax.random.normal(k, shape)).astype(dtype)

    return {
        "num_heads": H,
        # fused QKV 1x1-conv projection and output projection (bf16 MXU operands)
        "wqkv": n(ks[0], (3 * C, C), dtype=jnp.bfloat16),
        "bqkv": n(ks[1], (3 * C, 1)),
        "wo":   n(ks[2], (C, C), dtype=jnp.bfloat16),
        "bo":   n(ks[3], (C, 1)),
        # norm_attn / norm_ff (ChannelFirstLayerNorm) affine params, stored [C,1]
        "ln1_g": 1.0 + n(ks[4], (C, 1)), "ln1_b": n(ks[5], (C, 1)),
        "ln2_g": 1.0 + n(ks[6], (C, 1)), "ln2_b": n(ks[7], (C, 1)),
        # feed-forward pointwise convs: weights bf16 (MXU), biases f32
        "w1": n(ks[8], (F, C), dtype=jnp.bfloat16), "b1": n(ks[9], (F, 1)),
        "w2": n(ks[10], (C, F), dtype=jnp.bfloat16), "b2": n(ks[11], (C, 1)),
    }


# Plain-JAX reference of the output-determining path (same bf16-operand /
# f32-accumulate matmul math for a tight correctness check).
def reference_forward(x, x_mask, p):
    def ln_c(v, g, b, eps=1e-5):
        mu = v.mean(axis=1, keepdims=True)
        var = ((v - mu) ** 2).mean(axis=1, keepdims=True)
        return (v - mu) * lax.rsqrt(var + eps) * g[None] + b[None]

    h = x + x
    xn = ln_c(h, p["ln1_g"], p["ln1_b"])
    xm = (xn * x_mask).astype(jnp.bfloat16)
    hid = jax.nn.relu(
        jnp.einsum("fc,bct->bft", p["w1"], xm,
                   preferred_element_type=jnp.float32) + p["b1"][None])
    hm = (hid * x_mask).astype(jnp.bfloat16)
    y = (jnp.einsum("cf,bft->bct", p["w2"], hm,
                    preferred_element_type=jnp.float32) + p["b2"][None]) * x_mask
    return ln_c(xn + y, p["ln2_g"], p["ln2_b"])


if __name__ == "__main__":
    B, C, T, H = 2, 32, 16, 4

    key = jax.random.PRNGKey(0)
    kx, kp = jax.random.split(key)
    x = jax.random.normal(kx, (B, C, T), dtype=jnp.float32)

    lengths = jnp.array([T, T - 4], dtype=jnp.int32)
    pos = jnp.arange(T)
    x_mask = (pos[None, :] < lengths[:, None]).astype(jnp.float32)[:, None, :]   # [B,1,T]
    attn_mask = x_mask[:, :, :, None] * x_mask[:, :, None, :]                    # [B,1,T,T]

    params = init_params(kp, C, H)

    # Default (fast) path: the dead attention call is skipped.
    out = jax.block_until_ready(vits_transformer_block(x, x_mask, attn_mask, params))
    ref = jax.block_until_ready(reference_forward(x, x_mask, params))
    np.testing.assert_allclose(np.asarray(out), np.asarray(ref), rtol=1e-2, atol=1e-2)
    assert out.shape == (B, C, T)

    # Compile/run smoke test of the flag-guarded (discarded) attention kernel.
    attn = jax.block_until_ready(relative_mha_pallas(x, lengths, params))
    assert attn.shape == (B, C, T)
    assert not np.isnan(np.asarray(attn)).any()

    print("KERNEL_OK")
</pallas_src>

<mosaic_0001>
module attributes {stable_mosaic.version = 11 : i64} {
  func.func @_block_kernel(%arg0: i32, %arg1: memref<32x128xf32, #tpu.memory_space<vmem>>, %arg2: memref<1x128xf32, #tpu.memory_space<vmem>>, %arg3: memref<128x32xbf16, #tpu.memory_space<vmem>>, %arg4: memref<128x1xf32, #tpu.memory_space<vmem>>, %arg5: memref<32x128xbf16, #tpu.memory_space<vmem>>, %arg6: memref<32x5xf32, #tpu.memory_space<vmem>>, %arg7: memref<32x128xf32, #tpu.memory_space<vmem>>) attributes {dimension_semantics = [#tpu.dimension_semantics<parallel>], iteration_bounds = array<i64: 1>, scalar_prefetch = 0 : i64, scratch_operands = 0 : i64, tpu.core_type = #tpu.core_type<tc>, window_params = [{transform_indices = @transform_0, window_bounds = array<i64: 32, 128>}, {transform_indices = @transform_1, window_bounds = array<i64: 1, 128>}, {pipeline_mode = #tpu.pipeline_mode<synchronous>, transform_indices = @transform_2, window_bounds = array<i64: 128, 32>}, {pipeline_mode = #tpu.pipeline_mode<synchronous>, transform_indices = @transform_3, window_bounds = array<i64: 128, 1>}, {pipeline_mode = #tpu.pipeline_mode<synchronous>, transform_indices = @transform_4, window_bounds = array<i64: 32, 128>}, {pipeline_mode = #tpu.pipeline_mode<synchronous>, transform_indices = @transform_5, window_bounds = array<i64: 32, 5>}, {transform_indices = @transform_6, window_bounds = array<i64: 32, 128>}]} {
    %c0 = arith.constant 0 : index
    %c0_0 = arith.constant 0 : index
    %0 = vector.load %arg1[%c0, %c0_0] : memref<32x128xf32, #tpu.memory_space<vmem>>, vector<32x128xf32>
    %c0_1 = arith.constant 0 : index
    %c0_2 = arith.constant 0 : index
    %1 = vector.load %arg2[%c0_1, %c0_2] : memref<1x128xf32, #tpu.memory_space<vmem>>, vector<1x128xf32>
    %c0_3 = arith.constant 0 : index
    %c0_4 = arith.constant 0 : index
    %2 = vector.load %arg6[%c0_3, %c0_4] : memref<32x5xf32, #tpu.memory_space<vmem>>, vector<32x5xf32>
    %3 = vector.extract_strided_slice %2 {offsets = [0, 0], sizes = [32, 1], strides = [1, 1]} : vector<32x5xf32> to vector<32x1xf32>
    %4 = vector.extract_strided_slice %2 {offsets = [0, 1], sizes = [32, 1], strides = [1, 1]} : vector<32x5xf32> to vector<32x1xf32>
    %5 = vector.extract_strided_slice %2 {offsets = [0, 2], sizes = [32, 1], strides = [1, 1]} : vector<32x5xf32> to vector<32x1xf32>
    %6 = vector.extract_strided_slice %2 {offsets = [0, 3], sizes = [32, 1], strides = [1, 1]} : vector<32x5xf32> to vector<32x1xf32>
    %7 = vector.extract_strided_slice %2 {offsets = [0, 4], sizes = [32, 1], strides = [1, 1]} : vector<32x5xf32> to vector<32x1xf32>
    %8 = arith.addf %0, %0 : vector<32x128xf32>
    %cst = arith.constant dense<0.000000e+00> : vector<128xf32>
    %9 = vector.multi_reduction <add>, %8, %cst [0] : vector<32x128xf32> to vector<128xf32>
    %10 = vector.shape_cast %9 : vector<128xf32> to vector<1x128xf32>
    %cst_5 = arith.constant 3.200000e+01 : f32
    %11 = vector.broadcast %cst_5 : f32 to vector<1x128xf32>
    %12 = arith.divf %10, %11 : vector<1x128xf32>
    %13 = vector.broadcast %12 : vector<1x128xf32> to vector<32x128xf32>
    %14 = arith.subf %8, %13 : vector<32x128xf32>
    %15 = arith.mulf %14, %14 : vector<32x128xf32>
    %cst_6 = arith.constant dense<0.000000e+00> : vector<128xf32>
    %16 = vector.multi_reduction <add>, %15, %cst_6 [0] : vector<32x128xf32> to vector<128xf32>
    %17 = vector.shape_cast %16 : vector<128xf32> to vector<1x128xf32>
    %cst_7 = arith.constant 3.200000e+01 : f32
    %18 = vector.broadcast %cst_7 : f32 to vector<1x128xf32>
    %19 = arith.divf %17, %18 : vector<1x128xf32>
    %20 = vector.broadcast %12 : vector<1x128xf32> to vector<32x128xf32>
    %21 = arith.subf %8, %20 : vector<32x128xf32>
    %cst_8 = arith.constant 9.99999974E-6 : f32
    %22 = vector.broadcast %cst_8 : f32 to vector<1x128xf32>
    %23 = arith.addf %19, %22 : vector<1x128xf32>
    %24 = math.rsqrt %23 : vector<1x128xf32>
    %25 = vector.broadcast %24 : vector<1x128xf32> to vector<32x128xf32>
    %26 = arith.mulf %21, %25 : vector<32x128xf32>
    %27 = vector.broadcast %3 : vector<32x1xf32> to vector<32x128xf32>
    %28 = arith.mulf %26, %27 : vector<32x128xf32>
    %29 = vector.broadcast %4 : vector<32x1xf32> to vector<32x128xf32>
    %30 = arith.addf %28, %29 : vector<32x128xf32>
    %31 = vector.broadcast %1 : vector<1x128xf32> to vector<32x128xf32>
    %32 = arith.mulf %30, %31 : vector<32x128xf32>
    %33 = arith.truncf %32 : vector<32x128xf32> to vector<32x128xbf16>
    %c0_9 = arith.constant 0 : index
    %c0_10 = arith.constant 0 : index
    %34 = vector.load %arg3[%c0_9, %c0_10] : memref<128x32xbf16, #tpu.memory_space<vmem>>, vector<128x32xbf16>
    %cst_11 = arith.constant dense<0.000000e+00> : vector<128x128xf32>
    %35 = tpu.matmul %34, %33, %cst_11 {dimension_numbers = #tpu.dot_dimension_numbers<[1], [0], [0], [1], [0, 0, 1, 1], [], []>} : vector<128x32xbf16>, vector<32x128xbf16>, vector<128x128xf32> -> vector<128x128xf32>
    %c0_12 = arith.constant 0 : index
    %c0_13 = arith.constant 0 : index
    %36 = vector.load %arg4[%c0_12, %c0_13] : memref<128x1xf32, #tpu.memory_space<vmem>>, vector<128x1xf32>
    %37 = vector.broadcast %36 : vector<128x1xf32> to vector<128x128xf32>
    %38 = arith.addf %35, %37 : vector<128x128xf32>
    %cst_14 = arith.constant 0.000000e+00 : f32
    %39 = vector.broadcast %cst_14 : f32 to vector<128x128xf32>
    %40 = arith.maximumf %38, %39 : vector<128x128xf32>
    %41 = vector.broadcast %1 : vector<1x128xf32> to vector<128x128xf32>
    %42 = arith.mulf %40, %41 : vector<128x128xf32>
    %43 = arith.truncf %42 : vector<128x128xf32> to vector<128x128xbf16>
    %c0_15 = arith.constant 0 : index
    %c0_16 = arith.constant 0 : index
    %44 = vector.load %arg5[%c0_15, %c0_16] : memref<32x128xbf16, #tpu.memory_space<vmem>>, vector<32x128xbf16>
    %cst_17 = arith.constant dense<0.000000e+00> : vector<32x128xf32>
    %45 = tpu.matmul %44, %43, %cst_17 {dimension_numbers = #tpu.dot_dimension_numbers<[1], [0], [0], [1], [0, 0, 1, 1], [], []>} : vector<32x128xbf16>, vector<128x128xbf16>, vector<32x128xf32> -> vector<32x128xf32>
    %46 = vector.broadcast %7 : vector<32x1xf32> to vector<32x128xf32>
    %47 = arith.addf %45, %46 : vector<32x128xf32>
    %48 = vector.broadcast %1 : vector<1x128xf32> to vector<32x128xf32>
    %49 = arith.mulf %47, %48 : vector<32x128xf32>
    %50 = arith.addf %30, %49 : vector<32x128xf32>
    %cst_18 = arith.constant dense<0.000000e+00> : vector<128xf32>
    %51 = vector.multi_reduction <add>, %50, %cst_18 [0] : vector<32x128xf32> to vector<128xf32>
    %52 = vector.shape_cast %51 : vector<128xf32> to vector<1x128xf32>
    %cst_19 = arith.constant 3.200000e+01 : f32
    %53 = vector.broadcast %cst_19 : f32 to vector<1x128xf32>
    %54 = arith.divf %52, %53 : vector<1x128xf32>
    %55 = vector.broadcast %54 : vector<1x128xf32> to vector<32x128xf32>
    %56 = arith.subf %50, %55 : vector<32x128xf32>
    %57 = arith.mulf %56, %56 : vector<32x128xf32>
    %cst_20 = arith.constant dense<0.000000e+00> : vector<128xf32>
    %58 = vector.multi_reduction <add>, %57, %cst_20 [0] : vector<32x128xf32> to vector<128xf32>
    %59 = vector.shape_cast %58 : vector<128xf32> to vector<1x128xf32>
    %cst_21 = arith.constant 3.200000e+01 : f32
    %60 = vector.broadcast %cst_21 : f32 to vector<1x128xf32>
    %61 = arith.divf %59, %60 : vector<1x128xf32>
    %62 = vector.broadcast %54 : vector<1x128xf32> to vector<32x128xf32>
    %63 = arith.subf %50, %62 : vector<32x128xf32>
    %cst_22 = arith.constant 9.99999974E-6 : f32
    %64 = vector.broadcast %cst_22 : f32 to vector<1x128xf32>
    %65 = arith.addf %61, %64 : vector<1x128xf32>
    %66 = math.rsqrt %65 : vector<1x128xf32>
    %67 = vector.broadcast %66 : vector<1x128xf32> to vector<32x128xf32>
    %68 = arith.mulf %63, %67 : vector<32x128xf32>
    %69 = vector.broadcast %5 : vector<32x1xf32> to vector<32x128xf32>
    %70 = arith.mulf %68, %69 : vector<32x128xf32>
    %71 = vector.broadcast %6 : vector<32x1xf32> to vector<32x128xf32>
    %72 = arith.addf %70, %71 : vector<32x128xf32>
    %c0_23 = arith.constant 0 : index
    %c0_24 = arith.constant 0 : index
    %73 = vector.load %arg7[%c0_23, %c0_24] : memref<32x128xf32, #tpu.memory_space<vmem>>, vector<32x128xf32>
    tpu.vector_store %arg7[%c0_23, %c0_24], %72 {strides = array<i32>} : memref<32x128xf32, #tpu.memory_space<vmem>>, vector<32x128xf32>,
    return
  }
  func.func @transform_0(%arg0: i32) -> (i32, i32) {
    %c0_i32 = arith.constant 0 : i32
    %c0_i32_0 = arith.constant 0 : i32
    return %c0_i32, %arg0 : i32, i32
  }
  func.func @transform_1(%arg0: i32) -> (i32, i32) {
    %c0_i32 = arith.constant 0 : i32
    %c0_i32_0 = arith.constant 0 : i32
    return %c0_i32, %arg0 : i32, i32
  }
  func.func @transform_2(%arg0: i32) -> (i32, i32) {
    %c0_i32 = arith.constant 0 : i32
    %c0_i32_0 = arith.constant 0 : i32
    %c0_i32_1 = arith.constant 0 : i32
    return %c0_i32, %c0_i32_0 : i32, i32
  }
  func.func @transform_3(%arg0: i32) -> (i32, i32) {
    %c0_i32 = arith.constant 0 : i32
    %c0_i32_0 = arith.constant 0 : i32
    %c0_i32_1 = arith.constant 0 : i32
    return %c0_i32, %c0_i32_0 : i32, i32
  }
  func.func @transform_4(%arg0: i32) -> (i32, i32) {
    %c0_i32 = arith.constant 0 : i32
    %c0_i32_0 = arith.constant 0 : i32
    %c0_i32_1 = arith.constant 0 : i32
    return %c0_i32, %c0_i32_0 : i32, i32
  }
  func.func @transform_5(%arg0: i32) -> (i32, i32) {
    %c0_i32 = arith.constant 0 : i32
    %c0_i32_0 = arith.constant 0 : i32
    %c0_i32_1 = arith.constant 0 : i32
    return %c0_i32, %c0_i32_0 : i32, i32
  }
  func.func @transform_6(%arg0: i32) -> (i32, i32) {
    %c0_i32 = arith.constant 0 : i32
    %c0_i32_0 = arith.constant 0 : i32
    return %c0_i32, %arg0 : i32, i32
  }
}

</mosaic_0001>

<bundles_post_ra>
// kernel: tpu_custom_call.1
= control target key start
LH: loop header
LB: loop body
LE: loop exit
PB: predicated region body
PF: predicated region fallthrough
CT: control target
= control target key end

     0   :  { %v764_v1 = vmov 1   ;;  %v765_v2 = vmov 0   ;;  %s1002_s0 = inlined_call_operand.vmem [shape: f32[32,128], index: 0, kind: input, shape index: {}]   ;;  %s1003_s1 = inlined_call_operand.vmem [shape: f32[1,128], index: 1, kind: input, shape index: {}]   ;;  %s1004_s2 = inlined_call_operand.vmem [shape: bf16[128,32], index: 2, kind: input, shape index: {}]   ;;  %s1005_s3 = inlined_call_operand.vmem [shape: f32[128,1], index: 3, kind: input, shape index: {}]   ;;  %s1006_s4 = inlined_call_operand.vmem [shape: bf16[32,128], index: 4, kind: input, shape index: {}]   ;;  %s1007_s5 = inlined_call_operand.vmem [shape: f32[32,5], index: 5, kind: input, shape index: {}]   ;;  %s1008_s6 = inlined_call_operand.hbm [shape: f32[32,128], index: 6, kind: output, shape index: {}]  }
   0x1   :  { %v810_v0 = vld [vmem:[%s1007_s5] sm:$0xff]  ;;  %714 = vset.pattern.permute.xlu1 %v764_v1  ;;  %713 = vset.pattern.permute.xlu0 %v765_v2  ;;  %v817_v3 = vld [vmem:[%s1007_s5 + $0x8] sm:$0xff]  ;;  %v822_v4 = vld [vmem:[%s1007_s5 + $0x10] sm:$0xff] }
   0x2   :  { %98 = vperm.xlu1 %714, %v810_v0   ;;  %75 = vperm.xlu0 %713, %v810_v0   ;;  %v829_v5 = vld [vmem:[%s1007_s5 + $0x18] sm:$0xff] }
   0x6   :  { %102 = vperm.xlu1 %714, %v817_v3   ;;  %80 = vperm.xlu0 %713, %v817_v3  }
   0x7   :  { %11 = vsyncpa [#allocation3], 0  ;;  %v25_v6 = vld [vmem:[%s1002_s0] sm:$0xff]  ;;  %v26_v7 = vld [vmem:[%s1002_s0 + $0x8] sm:$0xff]  ;;  %vm281_vm0 = vcmask 261120  }
   0x8   :  { %v34_v8 = vadd.f32 %v25_v6, %v25_v6  ;;  %v35_v9 = vadd.f32 %v26_v7, %v26_v7  ;;  %v27_v10 = vld [vmem:[%s1002_s0 + $0x10] sm:$0xff]  ;;  %v28_v13 = vld [vmem:[%s1002_s0 + $0x18] sm:$0xff]  ;;  %v726_v14 = vld [vmem:[%s1004_s2] sm:$0xff]  }
   0x9   :  { %v36_v11 = vadd.f32 %v27_v10, %v27_v10  ;;  %v37_v15 = vadd.f32 %v28_v13, %v28_v13  ;;  %669 = vmatprep.mubr.msk.bf16.mxu0 %vm281_vm0, %v726_v14  ;;  %v145_v23 = vld [vmem:[%s1005_s3] sm:$0xff]  ;;  %v146_v24 = vld [vmem:[%s1005_s3 + $0x8] sm:$0xff]  ;;  %v147_v25 = vld [vmem:[%s1005_s3 + $0x10] sm:$0xff] }
   0xa   :  { %715 = vset.pattern.permute.xlu1 %v765_v2  ;;  %85 = vperm.xlu0 %713, %v822_v4   ;;  %v38_v12 = vadd.f32 %v35_v9, %v34_v8  ;;  %v149_v27 = vld [vmem:[%s1005_s3 + $0x20] sm:$0xff]  ;;  %v148_v28 = vld [vmem:[%s1005_s3 + $0x18] sm:$0xff]  ;;  %v151_v30 = vld [vmem:[%s1005_s3 + $0x30] sm:$0xff] }
   0xb   :  { %90 = vperm.xlu1 %715, %v829_v5   ;;  %v150_v31 = vld [vmem:[%s1005_s3 + $0x28] sm:$0xff]  ;;  %v153_v34 = vld [vmem:[%s1005_s3 + $0x40] sm:$0xff]  ;;  %v152_v35 = vld [vmem:[%s1005_s3 + $0x38] sm:$0xff] }
   0xc   :  { %v39_v16 = vadd.f32 %v38_v12, %v36_v11  ;;  %v155_v39 = vld [vmem:[%s1005_s3 + $0x50] sm:$0xff]  ;;  %v154_v40 = vld [vmem:[%s1005_s3 + $0x48] sm:$0xff]  ;;  %v157_v44 = vld [vmem:[%s1005_s3 + $0x60] sm:$0xff] }
   0xd   :  { %v156_v45 = vld [vmem:[%s1005_s3 + $0x58] sm:$0xff]  ;;  %v159_v48 = vld [vmem:[%s1005_s3 + $0x70] sm:$0xff]  ;;  %v158_v49 = vld [vmem:[%s1005_s3 + $0x68] sm:$0xff] }
   0xe   :  { %716 = vset.pattern.permute.xlu0 %v764_v1  ;;  %v40_v17 = vadd.f32 %v39_v16, %v37_v15  ;;  %v160_v51 = vld [vmem:[%s1005_s3 + $0x78] sm:$0xff]  ;;  %v904_v10 = vld [vmem:[%s1003_s1] ss:$0 sm:$0xff] }
   0xf   :  { %717 = vset.pattern.permute.xlu1 %v764_v1  ;;  %106 = vperm.xlu0 %716, %v822_v4  }
  0x10   :  { %110 = vperm.xlu1 %717, %v829_v5   ;;  %v41_v18 = vrot.slane %v40_v17, 4 }
  0x12   :  { %v42_v19 = vadd.f32 %v41_v18, %v40_v17 }
  0x13   :  { %719 = vset.pattern.permute.xlu0 %v765_v2 }
  0x14   :  { %718 = vset.pattern.permute.xlu1 %v765_v2  ;;  %v43_v20 = vrot.slane %v42_v19, 2  ;;  %168 = vperm.xlu0 %719, %v146_v24  }
  0x15   :  { %163 = vperm.xlu1 %718, %v145_v23  }
  0x16   :  { %v44_v21 = vadd.f32 %v43_v20, %v42_v19 }
  0x18   :  { %v45_v22 = vrot.slane %v44_v21, 1  ;;  %183 = vperm.xlu0 %719, %v149_v27  }
  0x19   :  { %173 = vperm.xlu1 %718, %v147_v25  }
  0x1a   :  { %v46_v26 = vadd.f32 %v45_v22, %v44_v21 }
  0x1c   :  { %v48_v29 = vmul.f32 0.03125, %v46_v26  ;;  %193 = vperm.xlu0 %719, %v151_v30   ;;  %v729_v30 = vld [vmem:[%s1004_s2 + $0x18] sm:$0xff]  }
  0x1d   :  { %178 = vperm.xlu1 %718, %v148_v28   ;;  %v727_v28 = vld [vmem:[%s1004_s2 + $0x8] sm:$0xff]  }
  0x1e   :  { %v49_v32 = vsub.f32 %v34_v8, %v48_v29  ;;  %v50_v33 = vsub.f32 %v35_v9, %v48_v29  ;;  %v51_v36 = vsub.f32 %v36_v11, %v48_v29  ;;  %v52_v41 = vsub.f32 %v37_v15, %v48_v29  ;;  %v728_v29 = vld [vmem:[%s1004_s2 + $0x10] sm:$0xff]  }
  0x20   :  { %203 = vperm.xlu0 %719, %v153_v34   ;;  %v53_v37 = vmul.f32 %v49_v32, %v49_v32  ;;  %v54_v38 = vmul.f32 %v50_v33, %v50_v33  ;;  %v55_v42 = vmul.f32 %v51_v36, %v51_v36  ;;  %v56_v46 = vmul.f32 %v52_v41, %v52_v41  ;;  %v733_v34 = vld [vmem:[%s1004_s2 + $0x38] sm:$0xff]  }
  0x21   :  { %188 = vperm.xlu1 %718, %v150_v31   ;;  %v730_v31 = vld [vmem:[%s1004_s2 + $0x20] sm:$0xff]  }
  0x22   :  { %v57_v43 = vadd.f32 %v54_v38, %v53_v37  ;;  %v767_v37 = vmov 2   ;;  %v768_v38 = vmov 3  }
  0x24   :  { %213 = vperm.xlu0 %719, %v155_v39   ;;  %v58_v47 = vadd.f32 %v57_v43, %v55_v42 }
  0x25   :  { %198 = vperm.xlu1 %718, %v152_v35   ;;  %v734_v35 = vld [vmem:[%s1006_s4] sm:$0xff]  }
  0x26   :  { %v59_v50 = vadd.f32 %v58_v47, %v56_v46  ;;  %701 = vmatprep.mubr.bf16.mxu1 %v734_v35 }
  0x28   :  { %223 = vperm.xlu0 %719, %v157_v44   ;;  %v60_v52 = vrot.slane %v59_v50, 4 }
  0x29   :  { %208 = vperm.xlu1 %718, %v154_v40  }
  0x2a   :  { %v61_v53 = vadd.f32 %v60_v52, %v59_v50 }
  0x2c   :  { %233 = vperm.xlu0 %719, %v159_v48   ;;  %v62_v54 = vrot.slane %v61_v53, 2 }
  0x2d   :  { %218 = vperm.xlu1 %718, %v156_v45  }
  0x2e   :  { %v63_v55 = vadd.f32 %v62_v54, %v61_v53 }
  0x30   :  { %v64_v56 = vrot.slane %v63_v55, 1 }
  0x31   :  { %228 = vperm.xlu1 %718, %v158_v49  }
  0x32   :  { %v65_v57 = vadd.f32 %v64_v56, %v63_v55 }
  0x34   :  { %v66_v58 = vmul.f32 0.03125, %v65_v57 }
  0x35   :  { %238 = vperm.xlu1 %718, %v160_v51  }
  0x36   :  { %v67_v59 = vadd.f32 1e-05, %v66_v58 }
  0x38   :  { %736 = vrsqrt.f32 %v67_v59 }
  0x42   :  { %v737_v60 = vpop.eup %736 }
  0x43   :  { %v69_v61 = vmul.f32 %v737_v60, %v49_v32  ;;  %v70_v2 = vmul.f32 %v737_v60, %v50_v33  ;;  %v71_v13 = vmul.f32 %v737_v60, %v51_v36  ;;  %v72_v15 = vmul.f32 %v737_v60, %v52_v41  ;;  %v731_v32 = vld [vmem:[%s1004_s2 + $0x28] sm:$0xff]   ;;  %v732_v33 = vld [vmem:[%s1004_s2 + $0x30] sm:$0xff]  }
  0x44   :  { %v766_v36 = vmov 4  }
  0x45   :  { %721 = vset.pattern.permute.xlu1 %v766_v36  ;;  %720 = vset.pattern.permute.xlu0 %v766_v36 }
  0x46   :  { %452 = vperm.xlu1 %721, %v817_v3   ;;  %448 = vperm.xlu0 %720, %v810_v0  }
  0x4a   :  { %456 = vperm.xlu1 %721, %v822_v4   ;;  %460 = vperm.xlu0 %720, %v829_v5  }
  0x4e   :  { %722 = vset.pattern.permute.xlu1 %v767_v37  ;;  %723 = vset.pattern.permute.xlu0 %v767_v37 }
  0x4f   :  { %567 = vperm.xlu1 %722, %v810_v0   ;;  %571 = vperm.xlu0 %723, %v817_v3  }
  0x53   :  { %575 = vperm.xlu1 %722, %v822_v4   ;;  %724 = vset.pattern.permute.xlu0 %v768_v38 }
  0x54   :  { %587 = vperm.xlu0 %724, %v810_v0  }
  0x57   :  { %579 = vperm.xlu1 %722, %v829_v5  }
  0x58   :  { %599 = vperm.xlu0 %724, %v829_v5  }
  0x5b   :  { %725 = vset.pattern.permute.xlu1 %v768_v38 }
  0x5c   :  { %591 = vperm.xlu1 %725, %v817_v3  }
  0x60   :  { %595 = vperm.xlu1 %725, %v822_v4  }
  0x81   :  { %v99_v62 = vpop.permute.xlu1 %98  ;;  %v76_v63 = vpop.permute.xlu0 %75 }
  0x82   :  { %v93_v1 = vmul.f32 %v76_v63, %v69_v61 }
  0x84   :  { %v899_v8 = vadd.f32 %v99_v62, %v93_v1 }
  0x85   :  { %v103_v6 = vpop.permute.xlu1 %102  ;;  %v81_v7 = vpop.permute.xlu0 %80 }
  0x86   :  { %v94_v9 = vmul.f32 %v81_v7, %v70_v2  ;;  %v123_v16 = vmul.f32 %v904_v10, %v899_v8 }
  0x88   :  { %v906_v11 = vadd.f32 %v103_v6, %v94_v9 }
  0x89   :  { %v86_v12 = vpop.permute.xlu0 %85 }
  0x8a   :  { %v91_v14 = vpop.permute.xlu1 %90  ;;  %v124_v17 = vmul.f32 %v904_v10, %v906_v11  ;;  %v95_v19 = vmul.f32 %v86_v12, %v71_v13 }
  0x8b   :  { %v96_v20 = vmul.f32 %v91_v14, %v72_v15 }
  0x8c   :  { %v127_v18 = vpack.c.bf16 %v124_v17, %v123_v16 }
  0x8e   :  { %v107_v21 = vpop.permute.xlu0 %106  ;;  %665 = vmatprep.subr.bf16.mxu0 %v127_v18 }
  0x8f   :  { %v912_v22 = vadd.f32 %v107_v21, %v95_v19  ;;  %v111_v23 = vpop.permute.xlu1 %110  ;;  %666 = vmatpush3.bf16.msra.mxu0 %v127_v18 }
  0x90   :  { %v914_v24 = vadd.f32 %v111_v23, %v96_v20 }
  0x91   :  { %v125_v25 = vmul.f32 %v904_v10, %v912_v22 }
  0x92   :  { %v126_v26 = vmul.f32 %v904_v10, %v914_v24 }
  0x93   :  { %v169_v41 = vpop.permute.xlu0 %168 }
  0x94   :  { %v128_v27 = vpack.c.bf16 %v126_v26, %v125_v25  ;;  %v164_v39 = vpop.permute.xlu1 %163 }
  0x96   :  { %667 = vmatprep.subr.bf16.mxu0 %v128_v27 }
  0x97   :  { %668 = vmatpush3.bf16.msra.mxu0 %v128_v27  ;;  %v184_v43 = vpop.permute.xlu0 %183 }
  0x98   :  { %v174_v40 = vpop.permute.xlu1 %173 }
  0x9a   :  { %670 = vmatmul.mubr.msk.bf16.vlgmr.msra.gmra.mrb[0].mxu0 %vm281_vm0, %v727_v28 }
  0x9b   :  { %673 = vmatprep.mubr.msk.bf16.mxu0 %vm281_vm0, %v728_v29  ;;  %v194_v45 = vpop.permute.xlu0 %193 }
  0x9c   :  { %v179_v42 = vpop.permute.xlu1 %178 }
  0x9f   :  { %v204_v4 = vpop.permute.xlu0 %203 }
  0xa0   :  { %v189_v44 = vpop.permute.xlu1 %188 }
  0xa2   :  { %674 = vmatmul.mubr.msk.bf16.gmra.mrb[4].mxu0 %vm281_vm0, %v729_v30 }
  0xa3   :  { %677 = vmatprep.mubr.msk.bf16.mxu0 %vm281_vm0, %v730_v31  ;;  %v214_v14 = vpop.permute.xlu0 %213 }
  0xa4   :  { %v199_v0 = vpop.permute.xlu1 %198 }
  0xa7   :  { %v224_v30 = vpop.permute.xlu0 %223 }
  0xa8   :  { %v209_v58 = vpop.permute.xlu1 %208 }
  0xaa   :  { %678 = vmatmul.mubr.msk.bf16.gmra.mrb[8].mxu0 %vm281_vm0, %v731_v32 }
  0xab   :  { %681 = vmatprep.mubr.msk.bf16.mxu0 %vm281_vm0, %v732_v33 }
  0xac   :  { %v219_v18 = vpop.permute.xlu1 %218 }
  0xb0   :  { %v229_v37 = vpop.permute.xlu1 %228 }
  0xb2   :  { %682 = vmatmul.mubr.msk.bf16.gmra.mrb[12].mxu0 %vm281_vm0, %v733_v34 }
 0x16d   :  { %v671_v46 = vpop.f32.mrb[0].mxu0 }
 0x16e   :  { %v349_v47 = vadd.f32 %v671_v46, %v174_v40  ;;  %v340_v48 = vpop.f32.mrb[1].mxu0 }
 0x16f   :  { %v341_v49 = vadd.f32 %v340_v48, %v164_v39  ;;  %v672_v50 = vpop.f32.mrb[2].mxu0 }
 0x170   :  { %v405_v51 = vmax.f32 %v349_v47, 0.0  ;;  %v352_v5 = vadd.f32 %v672_v50, %v179_v42  ;;  %v343_v52 = vpop.f32.mrb[3].mxu0  ;;  %v239_v50 = vpop.permute.xlu1 %238 }
 0x171   :  { %v403_v53 = vmax.f32 %v341_v49, 0.0  ;;  %v344_v3 = vadd.f32 %v343_v52, %v169_v41 }
 0x172   :  { %v406_v54 = vmax.f32 %v352_v5, 0.0  ;;  %v421_v56 = vmul.f32 %v904_v10, %v405_v51 }
 0x173   :  { %v404_v55 = vmax.f32 %v344_v3, 0.0  ;;  %v419_v59 = vmul.f32 %v904_v10, %v403_v53 }
 0x174   :  { %v422_v57 = vmul.f32 %v904_v10, %v406_v54 }
 0x175   :  { %v420_v60 = vmul.f32 %v904_v10, %v404_v55  ;;  %v675_v61 = vpop.f32.mrb[4].mxu0 }
 0x176   :  { %v365_v62 = vadd.f32 %v675_v61, %v194_v45  ;;  %v356_v63 = vpop.f32.mrb[5].mxu0  ;;  %v436_v1 = vpack.c.bf16 %v422_v57, %v421_v56 }
 0x177   :  { %v357_v2 = vadd.f32 %v356_v63, %v184_v43  ;;  %v676_v6 = vpop.f32.mrb[6].mxu0  ;;  %v435_v7 = vpack.c.bf16 %v420_v60, %v419_v59 }
 0x178   :  { %v409_v9 = vmax.f32 %v365_v62, 0.0  ;;  %v368_v12 = vadd.f32 %v676_v6, %v199_v0  ;;  %v359_v13 = vpop.f32.mrb[7].mxu0 }
 0x179   :  { %v407_v15 = vmax.f32 %v357_v2, 0.0  ;;  %v360_v16 = vadd.f32 %v359_v13, %v189_v44  ;;  %685 = vmatprep.subr.bf16.mxu1 %v435_v7  ;;  %v234_v44 = vpop.permute.xlu0 %233  ;;  %v453_v2 = vpop.permute.xlu1 %452 }
 0x17a   :  { %v410_v17 = vmax.f32 %v368_v12, 0.0  ;;  %686 = vmatpush3.bf16.msra.mxu1 %v435_v7  ;;  %v425_v20 = vmul.f32 %v904_v10, %v409_v9 }
 0x17b   :  { %v408_v19 = vmax.f32 %v360_v16, 0.0  ;;  %687 = vmatprep.subr.bf16.mxu1 %v436_v1  ;;  %v423_v23 = vmul.f32 %v904_v10, %v407_v15 }
 0x17c   :  { %v426_v21 = vmul.f32 %v904_v10, %v410_v17 }
 0x17d   :  { %v424_v25 = vmul.f32 %v904_v10, %v408_v19  ;;  %v679_v26 = vpop.f32.mrb[8].mxu0  ;;  %v449_v6 = vpop.permute.xlu0 %448 }
 0x17e   :  { %v381_v27 = vadd.f32 %v679_v26, %v214_v14  ;;  %v372_v28 = vpop.f32.mrb[9].mxu0  ;;  %688 = vmatpush3.bf16.msra.mxu1 %v436_v1  ;;  %v438_v29 = vpack.c.bf16 %v426_v21, %v425_v20  ;;  %v735_v1 = vld [vmem:[%s1006_s4 + $0x8] sm:$0xff]   ;;  %v457_v7 = vpop.permute.xlu1 %456  ;;  %s769_s4 = smov [#allocation2]  }
 0x17f   :  { %v373_v31 = vadd.f32 %v372_v28, %v204_v4  ;;  %v680_v32 = vpop.f32.mrb[10].mxu0  ;;  %v437_v33 = vpack.c.bf16 %v424_v25, %v423_v23  ;;  %s615_s11 = sshll.u32 %s769_s4, 4  ;;  %s616_s11 = int_to_ptr.vmem [resolvable:$true] %s615_s11 }
 0x180   :  { %v413_v34 = vmax.f32 %v381_v27, 0.0  ;;  %v384_v35 = vadd.f32 %v680_v32, %v219_v18  ;;  %v375_v36 = vpop.f32.mrb[11].mxu0  ;;  %s740_s12 = scalar_lea.vmem %s616_s11, 512  ;;  %p745_p1 = scmp.lt.s32.totalorder %s616_s11, %s616_s11 }
 0x181   :  { %v411_v38 = vmax.f32 %v373_v31, 0.0  ;;  %v376_v39 = vadd.f32 %v375_v36, %v209_v58  ;;  %689 = vmatprep.subr.bf16.mxu1 %v437_v33  ;;  %v461_v13 = vpop.permute.xlu0 %460  ;;  %p741_p0 = scmp.ne.s32.totalorder %s616_s11, %s740_s12  ;;  %p746_p2 = scmp.lt.s32.totalorder %s740_s12, %s740_s12 }
 0x182   :  { %v414_v40 = vmax.f32 %v384_v35, 0.0  ;;  %690 = vmatpush3.bf16.msra.mxu1 %v437_v33  ;;  %v429_v42 = vmul.f32 %v904_v10, %v413_v34 }
 0x183   :  { %v412_v41 = vmax.f32 %v376_v39, 0.0  ;;  %691 = vmatprep.subr.bf16.mxu1 %v438_v29  ;;  %v427_v45 = vmul.f32 %v904_v10, %v411_v38  ;;  %p747_p3 = por %p746_p2, %p745_p1 }
 0x184   :  { %v430_v43 = vmul.f32 %v904_v10, %v414_v40 }
 0x185   :  { %v428_v46 = vmul.f32 %v904_v10, %v412_v41  ;;  %v683_v47 = vpop.f32.mrb[12].mxu0  ;;  %p748_p4 = pnand %p747_p3, %p741_p0 }
 0x186   :  { %v397_v48 = vadd.f32 %v683_v47, %v234_v44  ;;  %v388_v0 = vpop.f32.mrb[13].mxu0  ;;  %692 = vmatpush3.bf16.msra.mxu1 %v438_v29  ;;  %v440_v49 = vpack.c.bf16 %v430_v43, %v429_v42 }
 0x187   :  { %v389_v51 = vadd.f32 %v388_v0, %v224_v30  ;;  %v684_v5 = vpop.f32.mrb[14].mxu0  ;;  %v439_v52 = vpack.c.bf16 %v428_v46, %v427_v45 }
 0x188   :  { %v417_v53 = vmax.f32 %v397_v48, 0.0  ;;  %v400_v3 = vadd.f32 %v684_v5, %v239_v50  ;;  %v391_v54 = vpop.f32.mrb[15].mxu0 }
 0x189   :  { %v415_v4 = vmax.f32 %v389_v51, 0.0  ;;  %v392_v55 = vadd.f32 %v391_v54, %v229_v37  ;;  %693 = vmatprep.subr.bf16.mxu1 %v439_v52 }
 0x18a   :  { %v418_v56 = vmax.f32 %v400_v3, 0.0  ;;  %694 = vmatpush3.bf16.msra.mxu1 %v439_v52  ;;  %v433_v58 = vmul.f32 %v904_v10, %v417_v53  ;;  %v572_v3 = vpop.permute.xlu0 %571 }
 0x18b   :  { %v416_v57 = vmax.f32 %v392_v55, 0.0  ;;  %695 = vmatprep.subr.bf16.mxu1 %v440_v49  ;;  %v431_v60 = vmul.f32 %v904_v10, %v415_v4 }
 0x18c   :  { %v434_v59 = vmul.f32 %v904_v10, %v418_v56 }
 0x18d   :  { %v432_v61 = vmul.f32 %v904_v10, %v416_v57 }
 0x18e   :  { %696 = vmatpush3.bf16.msra.mxu1 %v440_v49  ;;  %v442_v62 = vpack.c.bf16 %v434_v59, %v433_v58  ;;  %v568_v49 = vpop.permute.xlu1 %567  ;;  %v588_v55 = vpop.permute.xlu0 %587 }
 0x18f   :  { %v441_v63 = vpack.c.bf16 %v432_v61, %v431_v60 }
 0x191   :  { %697 = vmatprep.subr.bf16.mxu1 %v441_v63 }
 0x192   :  { %698 = vmatpush3.bf16.msra.mxu1 %v441_v63  ;;  %v576_v53 = vpop.permute.xlu1 %575 }
 0x193   :  { %699 = vmatprep.subr.bf16.mxu1 %v442_v62 }
 0x196   :  { %700 = vmatpush3.bf16.msra.mxu1 %v442_v62  ;;  %v580_v54 = vpop.permute.xlu1 %579 }
 0x199   :  { %702 = vmatmul.mubr.bf16.vlgmr.msra.gmra.mrb[0].mxu1 %v735_v1 }
 0x19a   :  { %v592_v4 = vpop.permute.xlu1 %591 }
 0x26c   :  { %v703_v9 = vpop.f32.mrb[0].mxu1 }
 0x26d   :  { %v509_v12 = vpop.f32.mrb[1].mxu1  ;;  %v518_v14 = vadd.f32 %v703_v9, %v457_v7 }
 0x26e   :  { %v510_v15 = vadd.f32 %v509_v12, %v449_v6  ;;  %v704_v16 = vpop.f32.mrb[2].mxu1  ;;  %v600_v6 = vpop.permute.xlu0 %599 }
 0x26f   :  { %v512_v17 = vpop.f32.mrb[3].mxu1  ;;  %v521_v19 = vadd.f32 %v704_v16, %v461_v13  ;;  %v526_v21 = vmul.f32 %v904_v10, %v518_v14 }
 0x270   :  { %v524_v18 = vmul.f32 %v904_v10, %v510_v15  ;;  %v513_v20 = vadd.f32 %v512_v17, %v453_v2  ;;  %v596_v2 = vpop.permute.xlu1 %595 }
 0x271   :  { %v527_v26 = vmul.f32 %v904_v10, %v521_v19  ;;  %v530_v28 = vadd.f32 %v526_v21, %v912_v22 }
 0x272   :  { %v525_v23 = vmul.f32 %v904_v10, %v513_v20  ;;  %v528_v25 = vadd.f32 %v524_v18, %v899_v8 }
 0x273   :  { %v531_v30 = vadd.f32 %v527_v26, %v914_v24 }
 0x274   :  { %v529_v27 = vadd.f32 %v525_v23, %v906_v11 }
 0x276   :  { %v532_v29 = vadd.f32 %v529_v27, %v528_v25 }
 0x278   :  { %v533_v31 = vadd.f32 %v532_v29, %v530_v28 }
 0x27a   :  { %v534_v32 = vadd.f32 %v533_v31, %v531_v30 }
 0x27c   :  { %v535_v33 = vrot.slane %v534_v32, 4 }
 0x27e   :  { %v536_v34 = vadd.f32 %v535_v33, %v534_v32 }
 0x280   :  { %v537_v35 = vrot.slane %v536_v34, 2 }
 0x282   :  { %v538_v36 = vadd.f32 %v537_v35, %v536_v34 }
 0x284   :  { %v539_v37 = vrot.slane %v538_v36, 1 }
 0x286   :  { %v540_v38 = vadd.f32 %v539_v37, %v538_v36 }
 0x288   :  { %v541_v39 = vmul.f32 0.03125, %v540_v38 }
 0x28a   :  { %v543_v40 = vsub.f32 %v529_v27, %v541_v39  ;;  %v544_v8 = vsub.f32 %v530_v28, %v541_v39  ;;  %v545_v41 = vsub.f32 %v531_v30, %v541_v39  ;;  %v542_v10 = vsub.f32 %v528_v25, %v541_v39 }
 0x28c   :  { %v547_v42 = vmul.f32 %v543_v40, %v543_v40  ;;  %v546_v11 = vmul.f32 %v542_v10, %v542_v10  ;;  %v548_v43 = vmul.f32 %v544_v8, %v544_v8  ;;  %v549_v44 = vmul.f32 %v545_v41, %v545_v41 }
 0x28e   :  { %v550_v22 = vadd.f32 %v547_v42, %v546_v11 }
 0x290   :  { %v551_v45 = vadd.f32 %v550_v22, %v548_v43 }
 0x292   :  { %v552_v24 = vadd.f32 %v551_v45, %v549_v44 }
 0x294   :  { %v553_v46 = vrot.slane %v552_v24, 4 }
 0x296   :  { %v554_v47 = vadd.f32 %v553_v46, %v552_v24 }
 0x298   :  { %v555_v48 = vrot.slane %v554_v47, 2 }
 0x29a   :  { %v556_v0 = vadd.f32 %v555_v48, %v554_v47 }
 0x29c   :  { %v557_v50 = vrot.slane %v556_v0, 1 }
 0x29e   :  { %v558_v51 = vadd.f32 %v557_v50, %v556_v0 }
 0x2a0   :  { %v559_v5 = vmul.f32 0.03125, %v558_v51 }
 0x2a2   :  { %v560_v52 = vadd.f32 1e-05, %v559_v5 }
 0x2a4   :  { %738 = vrsqrt.f32 %v560_v52 }
 0x2ae   :  { %v739_v56 = vpop.eup %738 }
 0x2af   :  { %v562_v57 = vmul.f32 %v739_v56, %v542_v10  ;;  %v564_v58 = vmul.f32 %v739_v56, %v544_v8  ;;  %v565_v59 = vmul.f32 %v739_v56, %v545_v41  ;;  %v563_v60 = vmul.f32 %v739_v56, %v543_v40 }
 0x2b1   :  { %v582_v61 = vmul.f32 %v568_v49, %v562_v57  ;;  %v584_v62 = vmul.f32 %v576_v53, %v564_v58  ;;  %v585_v63 = vmul.f32 %v580_v54, %v565_v59  ;;  %v583_v1 = vmul.f32 %v572_v3, %v563_v60 }
 0x2b3   :  { %v603_v7 = vadd.f32 %v592_v4, %v583_v1  ;;  %v602_v9 = vadd.f32 %v588_v55, %v582_v61  ;;  %v604_v12 = vadd.f32 %v596_v2, %v584_v62  ;;  %v605_v13 = vadd.f32 %v600_v6, %v585_v63 }
 0x2b5   :  { %607 = vst [vmem:[#allocation2 + $0x8] sm:$0xff] %v603_v7  ;;  %606 = vst [vmem:[#allocation2] sm:$0xff] %v602_v9 }
 0x2b6   :  { %608 = vst [vmem:[#allocation2 + $0x10] sm:$0xff] %v604_v12  ;;  %609 = vst [vmem:[#allocation2 + $0x18] sm:$0xff] %v605_v13 }
 0x2b7   :  { %751 = shalt.err (!%p748_p4)
}
 0x2b8   :  { %s752_s15 = scalar_lea.hbm %s1008_s6, 512 }
 0x2b9   :  { %p753_p5 = scmp.ne.s32.totalorder %s1008_s6, %s752_s15  ;;  %p756_p6 = scmp.lt.u32.totalorder %s752_s15, %s1008_s6 }
 0x2bb   :  { %p758_p7 = pnand %p756_p6, %p753_p5 }
 0x2bd   :  { %761 = shalt.err (!%p758_p7)
}
 0x2be   :  { %s770_s3 = smov 128   ;;  %s771_s19 = smov 8  }
 0x2bf   :  { %621 = dma.vmem_to_hbm [thread:$0]  %s616_s11, 512, %s1008_s6, [#allocation3], %s770_s3, %s770_s3, %s771_s19  }
 0x2c0   :  { %762 = dma.done.wait [#allocation3], 512  }
 0x2c1   :  { %763 = vsyncadd [#allocation3], 4294966784 }
 0x2c2   :  { %625 = vsyncpa [#allocation3], 1 }

</bundles_post_ra>
